<compile_context>
chip_gen: v6e
topology: v6e:2x2x1
jax: 0.10.0
libtpu: 0.0.40
codegen_flags: <defaults>
</compile_context>

<pallas_src>
import functools

import jax
import jax.numpy as jnp
from jax import lax
from jax.experimental import pallas as pl
from jax.experimental.pallas import tpu as pltpu


# --- activations (mirrors get_activation_function; 'relu' is the chosen one) ---
_ACTIVATIONS = {
    "relu": lambda x: jnp.maximum(x, 0.0),
    "leaky_relu": lambda x: jnp.where(x >= 0, x, 0.1 * x),
    "elu": lambda x: jnp.where(x > 0, x, jnp.expm1(x)),
    "selu": jax.nn.selu,
    "tanh": jnp.tanh,
    "gelu": jax.nn.gelu,
}

_LANE = 128


def _round_up(n, m):
    return ((n + m - 1) // m) * m


def _mlp_kernel(*refs, n_hidden, act_fn):
    """Fused MLP on one batch tile.

    refs layout (inputs then output):
      x_ref (Bt, Cin)                               bf16 batch tile
      [w_ref (Ci, Co), b_ref (1, Co)] * n_hidden    f32, VMEM-resident
      w_out_row_ref (1, Hp)                         f32 output-head row
      b_out_ref (1,)                                f32 scalar in SMEM
      o_ref (1, Bt)                                 f32 lane-dense output row
    """
    x_ref = refs[0]
    idx = 1
    h = x_ref[...].astype(jnp.float32)
    for _ in range(n_hidden):
        w_ref, b_ref = refs[idx], refs[idx + 1]
        idx += 2
        h = jnp.dot(h, w_ref[...], preferred_element_type=jnp.float32) + b_ref[...]
        h = act_fn(h)
        # TODO(synk): training-mode dropout (stateful PRNG mask) omitted;
        # eval-mode nn.Dropout is the identity, which matches this forward.
    w_out_row_ref, b_out_ref = refs[idx], refs[idx + 1]
    o_ref = refs[idx + 2]
    # Lane-dense Cout=1 head: contract (1, Hp) x (Bt, Hp) over Hp on the MXU.
    # Result is a (1, Bt) row -> full-lane unmasked stores instead of a
    # lane-width-1 (Bt, 1) column writeback.
    y = lax.dot_general(
        w_out_row_ref[...],
        h,
        dimension_numbers=(((1,), (1,)), ((), ())),
        preferred_element_type=jnp.float32,
    )
    o_ref[...] = (y + b_out_ref[0]).astype(o_ref.dtype)


def _choose_block_batch(B):
    if B <= 1024:
        # One tile covering the whole (padded) batch; sublane aligned.
        return _round_up(B, 8)
    # Multiple tiles: lane-dense output needs a 128-multiple tile width.
    # cdiv(B, 2) keeps >= 2 grid steps so both v7x TensorCores get work.
    return min(4096, _round_up(pl.cdiv(B, 2), _LANE))


def mlp_forward_pallas(x, hidden_params, out_params, *, act_fn):
    """Single fused pallas_call: grid over batch, weights resident in VMEM."""
    B, Cin = x.shape

    # x is the dominant HBM stream -> ship it as bf16. Weights stay f32 and
    # all accumulation is f32 (upcast happens in-kernel).
    x = x.astype(jnp.bfloat16)

    # Zero-pad hidden widths to 128-lane multiples (act(0) == 0 for every
    # supported activation and padded head weights are 0 -> math unchanged).
    padded_hidden = []
    prev = Cin
    for w, b in hidden_params:
        cin, cout = w.shape
        cout_p = _round_up(cout, _LANE)
        w_p = jnp.zeros((prev, cout_p), jnp.float32).at[:cin, :cout].set(w)
        b_p = jnp.zeros((1, cout_p), jnp.float32).at[0, :cout].set(b)
        padded_hidden.append((w_p, b_p))
        prev = cout_p
    w_out, b_out = out_params
    h_last = w_out.shape[0]
    w_out_row = jnp.zeros((1, prev), jnp.float32).at[0, :h_last].set(w_out[:, 0])
    b_out_s = b_out.reshape((1,)).astype(jnp.float32)

    block_batch = _choose_block_batch(B)
    Bp = _round_up(B, block_batch)
    if Bp != B:
        x = jnp.pad(x, ((0, Bp - B), (0, 0)))
    grid = (Bp // block_batch,)

    inputs = [x]
    in_specs = [pl.BlockSpec((block_batch, Cin), lambda i: (i, 0))]
    for w_p, b_p in padded_hidden:
        cin_p, cout_p = w_p.shape
        inputs += [w_p, b_p]
        # Constant index_maps -> weights/biases DMA'd once, resident across tiles.
        in_specs += [
            pl.BlockSpec((cin_p, cout_p), lambda i: (0, 0)),
            pl.BlockSpec((1, cout_p), lambda i: (0, 0)),
        ]
    inputs += [w_out_row, b_out_s]
    in_specs += [
        pl.BlockSpec((1, prev), lambda i: (0, 0)),
        pl.BlockSpec(memory_space=pltpu.MemorySpace.SMEM),  # scalar output bias
    ]

    kernel = functools.partial(
        _mlp_kernel, n_hidden=len(padded_hidden), act_fn=act_fn
    )
    out = pl.pallas_call(
        kernel,
        out_shape=jax.ShapeDtypeStruct((1, Bp), jnp.float32),
        grid=grid,
        in_specs=in_specs,
        out_specs=pl.BlockSpec((1, block_batch), lambda i: (0, i)),
        compiler_params=pltpu.CompilerParams(
            dimension_semantics=("parallel",),   # batch tiles -> both TCs on v7x
            vmem_limit_bytes=32 * 1024 * 1024,   # explicit (v5e scoped default 16 MiB)
        ),
    )(*inputs)
    # (1, Bp) lane-dense row -> (B, 1) column, drop batch padding.
    return out[0, :B].reshape(B, 1)


@functools.partial(jax.jit, static_argnames=("act_name",))
def _jitted_forward(x, hidden_params, out_params, act_name):
    return mlp_forward_pallas(
        x, hidden_params, out_params, act_fn=_ACTIVATIONS[act_name]
    )


class ClassPredictorPallas:
    """JAX/Pallas port of ClassPredictor (eval-mode forward), fully fused."""

    def __init__(self, input_size, hidden_sizes, key, activation="relu"):
        self.activation = activation
        params = []
        dims = [input_size] + list(hidden_sizes)
        keys = jax.random.split(key, len(dims))  # one key per layer incl. output
        # hidden layers (PyTorch nn.Linear default init)
        for i in range(len(hidden_sizes)):
            kw, kb = jax.random.split(keys[i])
            bound = 1.0 / jnp.sqrt(dims[i])
            w = jax.random.uniform(
                kw, (dims[i], dims[i + 1]), jnp.float32, -bound, bound
            )
            b = jax.random.uniform(kb, (dims[i + 1],), jnp.float32, -bound, bound)
            params.append((w, b))
        self.params = tuple(params)
        # output head -> 1
        kw, kb = jax.random.split(keys[-1])
        bound = 1.0 / jnp.sqrt(dims[-1])
        w_out = jax.random.uniform(kw, (dims[-1], 1), jnp.float32, -bound, bound)
        b_out = jax.random.uniform(kb, (1,), jnp.float32, -bound, bound)
        self.out_params = (w_out, b_out)

    def __call__(self, x):
        return _jitted_forward(x, self.params, self.out_params, self.activation)


if __name__ == "__main__":
    key = jax.random.PRNGKey(0)
    k_x, k_model = jax.random.split(key)

    batch = 8
    input_size = 32
    hidden_sizes = [128, 64]  # n_layers = 2

    x = jax.random.normal(k_x, (batch, input_size), dtype=jnp.float32)

    model = ClassPredictorPallas(input_size, hidden_sizes, k_model, activation="relu")
    out = model(x)
    out = jax.block_until_ready(out)

    assert out.shape == (batch, 1), out.shape

    # Pure-JAX reference (same math; x quantized to bf16 exactly as the kernel does).
    ref = x.astype(jnp.bfloat16).astype(jnp.float32)
    for w, b in model.params:
        ref = jnp.maximum(ref @ w + b, 0.0)
    w_out, b_out = model.out_params
    ref = ref @ w_out + b_out
    assert jnp.allclose(out, ref, atol=1e-2, rtol=1e-2), "mismatch vs reference"

    print("KERNEL_OK")
</pallas_src>

<mosaic_0001>
module attributes {stable_mosaic.version = 11 : i64} {
  func.func @_mlp_kernel(%arg0: i32, %arg1: memref<8x32xbf16, #tpu.memory_space<vmem>>, %arg2: memref<32x128xf32, #tpu.memory_space<vmem>>, %arg3: memref<1x128xf32, #tpu.memory_space<vmem>>, %arg4: memref<128x128xf32, #tpu.memory_space<vmem>>, %arg5: memref<1x128xf32, #tpu.memory_space<vmem>>, %arg6: memref<1x128xf32, #tpu.memory_space<vmem>>, %arg7: memref<1xf32, #tpu.memory_space<smem>>, %arg8: memref<1x8xf32, #tpu.memory_space<vmem>>) attributes {dimension_semantics = [#tpu.dimension_semantics<parallel>], iteration_bounds = array<i64: 1>, scalar_prefetch = 0 : i64, scratch_operands = 0 : i64, tpu.core_type = #tpu.core_type<tc>, window_params = [{transform_indices = @transform_0, window_bounds = array<i64: 8, 32>}, {pipeline_mode = #tpu.pipeline_mode<synchronous>, transform_indices = @transform_1, window_bounds = array<i64: 32, 128>}, {pipeline_mode = #tpu.pipeline_mode<synchronous>, transform_indices = @transform_2, window_bounds = array<i64: 1, 128>}, {pipeline_mode = #tpu.pipeline_mode<synchronous>, transform_indices = @transform_3, window_bounds = array<i64: 128, 128>}, {pipeline_mode = #tpu.pipeline_mode<synchronous>, transform_indices = @transform_4, window_bounds = array<i64: 1, 128>}, {pipeline_mode = #tpu.pipeline_mode<synchronous>, transform_indices = @transform_5, window_bounds = array<i64: 1, 128>}, {transform_indices = @transform_6, window_bounds = array<i64: 1>}, {transform_indices = @transform_7, window_bounds = array<i64: 1, 8>}]} {
    %c0 = arith.constant 0 : index
    %c0_0 = arith.constant 0 : index
    %0 = vector.load %arg1[%c0, %c0_0] : memref<8x32xbf16, #tpu.memory_space<vmem>>, vector<8x32xbf16>
    %1 = arith.extf %0 : vector<8x32xbf16> to vector<8x32xf32>
    %c0_1 = arith.constant 0 : index
    %c0_2 = arith.constant 0 : index
    %2 = vector.load %arg2[%c0_1, %c0_2] : memref<32x128xf32, #tpu.memory_space<vmem>>, vector<32x128xf32>
    %cst = arith.constant dense<0.000000e+00> : vector<8x128xf32>
    %3 = tpu.matmul %1, %2, %cst {dimension_numbers = #tpu.dot_dimension_numbers<[1], [0], [0], [1], [0, 0, 1, 1], [], []>} : vector<8x32xf32>, vector<32x128xf32>, vector<8x128xf32> -> vector<8x128xf32>
    %c0_3 = arith.constant 0 : index
    %c0_4 = arith.constant 0 : index
    %4 = vector.load %arg3[%c0_3, %c0_4] : memref<1x128xf32, #tpu.memory_space<vmem>>, vector<1x128xf32>
    %5 = vector.broadcast %4 : vector<1x128xf32> to vector<8x128xf32>
    %6 = arith.addf %3, %5 : vector<8x128xf32>
    %cst_5 = arith.constant 0.000000e+00 : f32
    %7 = vector.broadcast %cst_5 : f32 to vector<8x128xf32>
    %8 = arith.maximumf %6, %7 : vector<8x128xf32>
    %c0_6 = arith.constant 0 : index
    %c0_7 = arith.constant 0 : index
    %9 = vector.load %arg4[%c0_6, %c0_7] : memref<128x128xf32, #tpu.memory_space<vmem>>, vector<128x128xf32>
    %cst_8 = arith.constant dense<0.000000e+00> : vector<8x128xf32>
    %10 = tpu.matmul %8, %9, %cst_8 {dimension_numbers = #tpu.dot_dimension_numbers<[1], [0], [0], [1], [0, 0, 1, 1], [], []>} : vector<8x128xf32>, vector<128x128xf32>, vector<8x128xf32> -> vector<8x128xf32>
    %c0_9 = arith.constant 0 : index
    %c0_10 = arith.constant 0 : index
    %11 = vector.load %arg5[%c0_9, %c0_10] : memref<1x128xf32, #tpu.memory_space<vmem>>, vector<1x128xf32>
    %12 = vector.broadcast %11 : vector<1x128xf32> to vector<8x128xf32>
    %13 = arith.addf %10, %12 : vector<8x128xf32>
    %cst_11 = arith.constant 0.000000e+00 : f32
    %14 = vector.broadcast %cst_11 : f32 to vector<8x128xf32>
    %15 = arith.maximumf %13, %14 : vector<8x128xf32>
    %c0_12 = arith.constant 0 : index
    %c0_13 = arith.constant 0 : index
    %16 = vector.load %arg6[%c0_12, %c0_13] : memref<1x128xf32, #tpu.memory_space<vmem>>, vector<1x128xf32>
    %cst_14 = arith.constant dense<0.000000e+00> : vector<1x8xf32>
    %17 = tpu.matmul %16, %15, %cst_14 {dimension_numbers = #tpu.dot_dimension_numbers<[1], [1], [0], [0], [0, 0, 1, 0], [], []>} : vector<1x128xf32>, vector<8x128xf32>, vector<1x8xf32> -> vector<1x8xf32>
    %c0_15 = arith.constant 0 : index
    %18 = memref.load %arg7[%c0_15] : memref<1xf32, #tpu.memory_space<smem>>
    %19 = vector.broadcast %18 : f32 to vector<1x8xf32>
    %20 = arith.addf %17, %19 : vector<1x8xf32>
    %c0_16 = arith.constant 0 : index
    %c0_17 = arith.constant 0 : index
    %21 = vector.load %arg8[%c0_16, %c0_17] : memref<1x8xf32, #tpu.memory_space<vmem>>, vector<1x8xf32>
    tpu.vector_store %arg8[%c0_16, %c0_17], %20 {strides = array<i32>} : memref<1x8xf32, #tpu.memory_space<vmem>>, vector<1x8xf32>,
    return
  }
  func.func @transform_0(%arg0: i32) -> (i32, i32) {
    %c0_i32 = arith.constant 0 : i32
    %c0_i32_0 = arith.constant 0 : i32
    return %arg0, %c0_i32 : i32, i32
  }
  func.func @transform_1(%arg0: i32) -> (i32, i32) {
    %c0_i32 = arith.constant 0 : i32
    %c0_i32_0 = arith.constant 0 : i32
    %c0_i32_1 = arith.constant 0 : i32
    return %c0_i32, %c0_i32_0 : i32, i32
  }
  func.func @transform_2(%arg0: i32) -> (i32, i32) {
    %c0_i32 = arith.constant 0 : i32
    %c0_i32_0 = arith.constant 0 : i32
    %c0_i32_1 = arith.constant 0 : i32
    return %c0_i32, %c0_i32_0 : i32, i32
  }
  func.func @transform_3(%arg0: i32) -> (i32, i32) {
    %c0_i32 = arith.constant 0 : i32
    %c0_i32_0 = arith.constant 0 : i32
    %c0_i32_1 = arith.constant 0 : i32
    return %c0_i32, %c0_i32_0 : i32, i32
  }
  func.func @transform_4(%arg0: i32) -> (i32, i32) {
    %c0_i32 = arith.constant 0 : i32
    %c0_i32_0 = arith.constant 0 : i32
    %c0_i32_1 = arith.constant 0 : i32
    return %c0_i32, %c0_i32_0 : i32, i32
  }
  func.func @transform_5(%arg0: i32) -> (i32, i32) {
    %c0_i32 = arith.constant 0 : i32
    %c0_i32_0 = arith.constant 0 : i32
    %c0_i32_1 = arith.constant 0 : i32
    return %c0_i32, %c0_i32_0 : i32, i32
  }
  func.func @transform_6(%arg0: i32) -> i32 {
    %c0_i32 = arith.constant 0 : i32
    %c0_i32_0 = arith.constant 0 : i32
    return %c0_i32 : i32
  }
  func.func @transform_7(%arg0: i32) -> (i32, i32) {
    %c0_i32 = arith.constant 0 : i32
    %c0_i32_0 = arith.constant 0 : i32
    return %c0_i32, %arg0 : i32, i32
  }
}

</mosaic_0001>

<bundles_post_ra>
// kernel: _jitted_forward.1
= control target key start
LH: loop header
LB: loop body
LE: loop exit
PB: predicated region body
PF: predicated region fallthrough
CT: control target
= control target key end

     0   :  { %v402_v1 = vmov 0.0   ;;  %vm403_vm0 = vmmov 0   ;;  %vm41_vm1 = vcmask 261120   ;;  %s550_s0 = inlined_call_operand.vmem [shape: bf16[8,32], index: 0, kind: input, shape index: {}]   ;;  %s551_s1 = inlined_call_operand.vmem [shape: f32[32,128], index: 1, kind: input, shape index: {}]   ;;  %s552_s2 = inlined_call_operand.vmem [shape: f32[1,128], index: 2, kind: input, shape index: {}]   ;;  %s553_s3 = inlined_call_operand.vmem [shape: f32[128,128], index: 3, kind: input, shape index: {}]   ;;  %s554_s4 = inlined_call_operand.vmem [shape: f32[1,128], index: 4, kind: input, shape index: {}]   ;;  %s555_s5 = inlined_call_operand.vmem [shape: f32[1,128], index: 5, kind: input, shape index: {}]   ;;  %s556_s6 = inlined_call_operand.<no memory space> [shape: f32[1], index: 6, kind: input, shape index: {}]   ;;  %s557_s7 = inlined_call_operand.hbm [shape: f32[1,8], index: 7, kind: output, shape index: {}]  }
   0x1   :  { %v33_v0 = vld [vmem:[%s551_s1 + $0x18] sm:$0xff]  ;;  %326 = vmatprep.subr.mxu0 %v402_v1  ;;  %v32_v2 = vld [vmem:[%s551_s1 + $0x10] sm:$0xff]  ;;  %334 = vmatprep.mubr.msk.f32.mxu0 %vm403_vm0, %v402_v1  ;;  %v28_v4 = vld [vmem:[%s550_s0] sm:$0xf] }
   0x2   :  { %v131_v3 = vld [vmem:[%s553_s3 + $0x78] sm:$0xff]  ;;  %327 = vmatpush3.msra.mxu0 %v33_v0  ;;  %337 = vmatprep.subr.mxu1 %v402_v1  ;;  %v130_v5 = vld [vmem:[%s553_s3 + $0x70] sm:$0xff]  ;;  %v31_v6 = vld [vmem:[%s551_s1 + $0x8] sm:$0xff]  ;;  %v29_v9 = vunpack.c.l.bf16 %v28_v4 }
   0x3   :  { %328 = vmatprep.subr.mxu0 %v402_v1  ;;  %338 = vmatpush3.msra.mxu1 %v131_v3  ;;  %v129_v7 = vld [vmem:[%s553_s3 + $0x68] sm:$0xff]  ;;  %v30_v8 = vld [vmem:[%s551_s1] sm:$0xff] }
   0x4   :  { %329 = vmatpush3.msra.mxu0 %v32_v2  ;;  %339 = vmatprep.subr.mxu1 %v402_v1  ;;  %v128_v10 = vld [vmem:[%s553_s3 + $0x60] sm:$0xff] }
   0x5   :  { %330 = vmatprep.subr.mxu0 %v402_v1  ;;  %340 = vmatpush3.msra.mxu1 %v130_v5 }
   0x6   :  { %331 = vmatpush3.msra.mxu0 %v31_v6  ;;  %341 = vmatprep.subr.mxu1 %v402_v1 }
   0x7   :  { %13 = vsyncpa [#allocation4], 0  ;;  %332 = vmatprep.subr.mxu0 %v402_v1  ;;  %342 = vmatpush3.msra.mxu1 %v129_v7  ;;  %v127_v11 = vld [vmem:[%s553_s3 + $0x58] sm:$0xff]  ;;  %v126_v12 = vld [vmem:[%s553_s3 + $0x50] sm:$0xff]  ;;  %v212_v34 = vstv %s556_s6  ;;  %s404_s22 = smov [#allocation3]   ;;  %vm283_vm2 = vcmask 57344  }
   0x8   :  { %333 = vmatpush3.msra.mxu0 %v30_v8  ;;  %343 = vmatprep.subr.mxu1 %v402_v1  ;;  %v125_v13 = vld [vmem:[%s553_s3 + $0x48] sm:$0xff]  ;;  %v124_v14 = vld [vmem:[%s553_s3 + $0x40] sm:$0xff]  ;;  %v123_v15 = vld [vmem:[%s553_s3 + $0x38] sm:$0xff]  ;;  %s291_s23 = sshll.u32 %s404_s22, 4  ;;  %s292_s23 = int_to_ptr.vmem [resolvable:$true] %s291_s23 }
   0x9   :  { %335 = vmatmul.mubr.msk.f32.vlgmr.msra.gmra.mxu0 %vm41_vm1, %v29_v9  ;;  %344 = vmatpush3.msra.mxu1 %v128_v10  ;;  %v122_v16 = vld [vmem:[%s553_s3 + $0x30] sm:$0xff]  ;;  %v121_v17 = vld [vmem:[%s553_s3 + $0x28] sm:$0xff]  ;;  %v120_v18 = vld [vmem:[%s553_s3 + $0x20] sm:$0xff]  ;;  %s384_s24 = scalar_lea.vmem %s292_s23, 32  ;;  %p385_p1 = scmp.lt.s32.totalorder %s292_s23, %s292_s23 }
   0xa   :  { %345 = vmatprep.subr.mxu1 %v402_v1  ;;  %369 = vmatprep.mubr.msk.f32.mxu1 %vm403_vm0, %v402_v1  ;;  %v119_v19 = vld [vmem:[%s553_s3 + $0x18] sm:$0xff]  ;;  %v118_v20 = vld [vmem:[%s553_s3 + $0x10] sm:$0xff]  ;;  %v117_v21 = vld [vmem:[%s553_s3 + $0x8] sm:$0xff] }
   0xb   :  { %346 = vmatpush3.msra.mxu1 %v127_v11  ;;  %372 = vmatprep.subr.mxu0 %v402_v1  ;;  %v116_v22 = vld [vmem:[%s553_s3] sm:$0xff] }
   0xc   :  { %347 = vmatprep.subr.mxu1 %v402_v1  ;;  %374 = vmatprep.mubr.msk.f32.mxu0 %vm403_vm0, %v402_v1  ;;  %v299_v23 = vld [vmem:[%s552_s2] ss:$0 sm:$0xff] }
   0xd   :  { %348 = vmatpush3.msra.mxu1 %v126_v12  ;;  %v301_v28 = vld [vmem:[%s554_s4] ss:$0 sm:$0xff]  ;;  %s380_s4 = scalar_lea.vmem %s292_s23, 16 }
   0xe   :  { %349 = vmatprep.subr.mxu1 %v402_v1  ;;  %v210_v33 = vld [vmem:[%s555_s5] sm:$0x1]  ;;  %p381_p0 = scmp.ne.s32.totalorder %s292_s23, %s380_s4  ;;  %p386_p2 = scmp.lt.s32.totalorder %s384_s24, %s380_s4 }
   0xf   :  { %350 = vmatpush3.msra.mxu1 %v125_v13 }
  0x10   :  { %351 = vmatprep.subr.mxu1 %v402_v1  ;;  %p387_p3 = por %p386_p2, %p385_p1 }
  0x11   :  { %352 = vmatpush3.msra.mxu1 %v124_v14 }
  0x12   :  { %353 = vmatprep.subr.mxu1 %v402_v1  ;;  %p388_p4 = pnand %p387_p3, %p381_p0 }
  0x13   :  { %354 = vmatpush3.msra.mxu1 %v123_v15 }
  0x14   :  { %355 = vmatprep.subr.mxu1 %v402_v1 }
  0x15   :  { %356 = vmatpush3.msra.mxu1 %v122_v16 }
  0x16   :  { %357 = vmatprep.subr.mxu1 %v402_v1 }
  0x17   :  { %358 = vmatpush3.msra.mxu1 %v121_v17 }
  0x18   :  { %359 = vmatprep.subr.mxu1 %v402_v1 }
  0x19   :  { %360 = vmatpush3.msra.mxu1 %v120_v18 }
  0x1a   :  { %361 = vmatprep.subr.mxu1 %v402_v1 }
  0x1b   :  { %362 = vmatpush3.msra.mxu1 %v119_v19 }
  0x1c   :  { %363 = vmatprep.subr.mxu1 %v402_v1 }
  0x1d   :  { %364 = vmatpush3.msra.mxu1 %v118_v20 }
  0x1e   :  { %365 = vmatprep.subr.mxu1 %v402_v1 }
  0x1f   :  { %366 = vmatpush3.msra.mxu1 %v117_v21 }
  0x20   :  { %367 = vmatprep.subr.mxu1 %v402_v1 }
  0x21   :  { %368 = vmatpush3.msra.mxu1 %v116_v22 }
  0xc9   :  { %v111_v24 = vpop.f32.mrf.mxu0 }
  0xca   :  { %v112_v25 = vadd.f32 %v299_v23, %v111_v24 }
  0xcb   :  { %v336_v26 = vpop.f32.mrf.mxu0 }
  0xcc   :  { %v115_v27 = vmax.f32 %v112_v25, 0.0 }
  0xce   :  { %370 = vmatmul.mubr.f32.vlgmr.msra.gmra.mxu1 %v115_v27 }
 0x18e   :  { %v205_v29 = vpop.f32.mrf.mxu1 }
 0x18f   :  { %v206_v30 = vadd.f32 %v301_v28, %v205_v29 }
 0x190   :  { %v371_v31 = vpop.f32.mrf.mxu1 }
 0x191   :  { %v209_v32 = vmax.f32 %v206_v30, 0.0 }
 0x193   :  { %373 = vmatpush3.xpose.msra.mxu0 %v209_v32 }
 0x196   :  { %375 = vmatmul.mubr.f32.vlgmr.msra.gmra.mxu0 %v210_v33 }
 0x256   :  { %v279_v35 = vpop.f32.mrf.mxu0 }
 0x257   :  { %v280_v36 = vadd.f32 %v279_v35, %v212_v34 }
 0x258   :  { %v376_v37 = vpop.f32.mrf.mxu0 }
 0x259   :  { %284 = vst.msk [vmem:[#allocation3] sm:$0x1] %vm283_vm2, %v280_v36 }
 0x25a   :  { %391 = shalt.err (!%p388_p4)
}
 0x25b   :  { %294 = dma.vmem_to_hbm [thread:$0]  %s292_s23, 16, %s557_s7, [#allocation4]  }
 0x25c   :  { %400 = dma.done.wait [#allocation4], 16  }
 0x25d   :  { %401 = vsyncadd [#allocation4], 4294967280 }
 0x25e   :  { %298 = vsyncpa [#allocation4], 1 }

</bundles_post_ra>
